<compile_context>
chip_gen: v6e
topology: v6e:2x2x1
jax: 0.10.0
libtpu: 0.0.40
codegen_flags: <defaults>
</compile_context>

<pallas_src>
import functools
import math

import jax
import jax.numpy as jnp
from jax.experimental import pallas as pl
from jax.experimental.pallas import tpu as pltpu

LANE = 128  # lane-padded logits width (columns 0 / 1 hold sc_1 / sc_2)


# ----------------------------------------------------------------------------
# Fused bilinear-discriminator kernel.
# ----------------------------------------------------------------------------
def _disc_kernel(c_ref, hpl_ref, hmi_ref, w_ref, b_ref, o_ref, *, out_pad):
    # u[i] = sum_j W[i, j] * c[j]   (MXU matmul, f32 accumulation)
    u = jnp.dot(w_ref[...], c_ref[...],
                preferred_element_type=jnp.float32)            # [H, 1]

    # Scatter u into lane column 0 (for h_pl) and column 1 (for h_mi) of a
    # 128-wide RHS so the score matmul produces one lane-dense output block.
    col = jax.lax.broadcasted_iota(jnp.int32, (u.shape[0], out_pad), 1)
    u0 = jnp.where(col == 0, u, 0.0)                           # [H, out_pad]
    u1 = jnp.where(col == 1, u, 0.0)                           # [H, out_pad]

    sc = (jnp.dot(hpl_ref[...], u0, preferred_element_type=jnp.float32)
          + jnp.dot(hmi_ref[...], u1, preferred_element_type=jnp.float32))
    o_ref[...] = sc + b_ref[0]                                 # bias (SMEM scalar)


def discriminator(c, h_pl, h_mi, weight, bias, s_bias1=None, s_bias2=None):
    """JAX/Pallas equivalent of Discriminator.forward.

    c       : [1, 32] (or [32]) shared context vector (c.expand_as(h_pl)).
    h_pl    : [N, 32] positive sample embeddings.
    h_mi    : [N, 32] negative sample embeddings.
    weight  : nn.Bilinear(32, 32, 1).weight, shape [1, 32, 32] (or [32, 32]).
    bias    : nn.Bilinear bias, shape [1] (or scalar).
    returns : logits [N, 2] = cat(sc_1, sc_2), matching the PyTorch module.
    """
    n, h = h_pl.shape
    c = jnp.asarray(c, jnp.float32).reshape(-1)
    if c.shape[0] != h:
        # TODO(synk): per-row (non-broadcast) context c is never produced by the
        # module's DGI usage; only the shared-context path is implemented.
        raise NotImplementedError("discriminator expects a shared context vector")
    c_col = c.reshape(h, 1)                                  # column layout for MXU
    w2 = jnp.asarray(weight, jnp.float32).reshape(h, h)      # squeeze [1, H, H]
    b1 = jnp.asarray(bias, jnp.float32).reshape(1)

    # Pad rows up to a multiple of the sublane width (8) so the single output
    # store is fully tile-aligned for any batch size.
    n_pad = ((n + 7) // 8) * 8
    hpl_f = h_pl.astype(jnp.float32)
    hmi_f = h_mi.astype(jnp.float32)
    if n_pad != n:
        pad = ((0, n_pad - n), (0, 0))
        hpl_f = jnp.pad(hpl_f, pad)
        hmi_f = jnp.pad(hmi_f, pad)

    out = pl.pallas_call(
        functools.partial(_disc_kernel, out_pad=LANE),
        out_shape=jax.ShapeDtypeStruct((n_pad, LANE), jnp.float32),
        in_specs=[
            pl.BlockSpec(memory_space=pltpu.MemorySpace.VMEM),   # c (column)
            pl.BlockSpec(memory_space=pltpu.MemorySpace.VMEM),   # h_pl
            pl.BlockSpec(memory_space=pltpu.MemorySpace.VMEM),   # h_mi
            pl.BlockSpec(memory_space=pltpu.MemorySpace.VMEM),   # W
            pl.BlockSpec(memory_space=pltpu.MemorySpace.SMEM),   # bias scalar
        ],
        out_specs=pl.BlockSpec(memory_space=pltpu.MemorySpace.VMEM),
    )(c_col, hpl_f, hmi_f, w2, b1)

    sc1 = out[:n, 0:1]
    sc2 = out[:n, 1:2]
    # Optional score biases (eval-path default is None); trivial adds stay in JAX.
    if s_bias1 is not None:
        sc1 = sc1 + jnp.asarray(s_bias1, jnp.float32)
    if s_bias2 is not None:
        sc2 = sc2 + jnp.asarray(s_bias2, jnp.float32)
    return jnp.concatenate([sc1, sc2], axis=1)               # logits [N, 2]


# ----------------------------------------------------------------------------
# Demo / self-test.
# ----------------------------------------------------------------------------
if __name__ == "__main__":
    N, H = 16, 32            # Bilinear(32, 32, 1) hard-codes the feature dim 32

    key = jax.random.PRNGKey(0)
    kc, kp, km, kw = jax.random.split(key, 4)

    c = jax.random.normal(kc, (1, H), jnp.float32)      # context (AvgReadout output)
    h_pl = jax.random.normal(kp, (N, H), jnp.float32)   # positive graph embeddings
    h_mi = jax.random.normal(km, (N, H), jnp.float32)   # negative graph embeddings

    # weights_init: xavier_uniform_ on the Bilinear weight, bias filled with 0.0.
    fan_in, fan_out = H * H, H                          # PyTorch fan calc for [1,H,H]
    lim = math.sqrt(6.0 / (fan_in + fan_out))
    weight = jax.random.uniform(kw, (1, H, H), jnp.float32, -lim, lim)
    bias = jnp.zeros((1,), jnp.float32)

    logits = discriminator(c, h_pl, h_mi, weight, bias)
    jax.block_until_ready(logits)

    # pure-JAX reference: sc[n, 0/1] = sum_ij h_{pl/mi}[n,i] * W[0,i,j] * c[j] + b
    u_ref = weight[0] @ c[0]
    ref = jnp.stack([h_pl @ u_ref, h_mi @ u_ref], axis=1) + bias[0]

    assert logits.shape == (N, 2)
    assert jnp.allclose(logits, ref, rtol=2e-2, atol=2e-2), (
        float(jnp.max(jnp.abs(logits - ref))))
    print("KERNEL_OK")
</pallas_src>

<mosaic_0001>
module attributes {stable_mosaic.version = 11 : i64} {
  func.func @_disc_kernel(%arg0: memref<32x1xf32, #tpu.memory_space<vmem>>, %arg1: memref<16x32xf32, #tpu.memory_space<vmem>>, %arg2: memref<16x32xf32, #tpu.memory_space<vmem>>, %arg3: memref<32x32xf32, #tpu.memory_space<vmem>>, %arg4: memref<1xf32, #tpu.memory_space<smem>>, %arg5: memref<16x128xf32, #tpu.memory_space<vmem>>) attributes {dimension_semantics = [], scalar_prefetch = 0 : i64, scratch_operands = 0 : i64, tpu.core_type = #tpu.core_type<tc>} {
    %c0 = arith.constant 0 : index
    %c0_0 = arith.constant 0 : index
    %0 = vector.load %arg3[%c0, %c0_0] : memref<32x32xf32, #tpu.memory_space<vmem>>, vector<32x32xf32>
    %c0_1 = arith.constant 0 : index
    %c0_2 = arith.constant 0 : index
    %1 = vector.load %arg0[%c0_1, %c0_2] : memref<32x1xf32, #tpu.memory_space<vmem>>, vector<32x1xf32>
    %cst = arith.constant dense<0.000000e+00> : vector<32x1xf32>
    %2 = tpu.matmul %0, %1, %cst {dimension_numbers = #tpu.dot_dimension_numbers<[1], [0], [0], [1], [0, 0, 1, 1], [], []>} : vector<32x32xf32>, vector<32x1xf32>, vector<32x1xf32> -> vector<32x1xf32>
    %3 = tpu.iota {dimensions = array<i32: 1>} : vector<32x128xi32>
    %c0_i32 = arith.constant 0 : i32
    %4 = vector.broadcast %c0_i32 : i32 to vector<32x128xi32>
    %5 = arith.cmpi eq, %3, %4 : vector<32x128xi32>
    %cst_3 = arith.constant 0.000000e+00 : f32
    %6 = vector.shape_cast %2 : vector<32x1xf32> to vector<32x1xf32>
    %7 = vector.broadcast %6 : vector<32x1xf32> to vector<32x128xf32>
    %8 = vector.broadcast %cst_3 : f32 to vector<32x128xf32>
    %9 = arith.select %5, %7, %8 : vector<32x128xi1>, vector<32x128xf32>
    %c1_i32 = arith.constant 1 : i32
    %10 = vector.broadcast %c1_i32 : i32 to vector<32x128xi32>
    %11 = arith.cmpi eq, %3, %10 : vector<32x128xi32>
    %cst_4 = arith.constant 0.000000e+00 : f32
    %12 = vector.shape_cast %2 : vector<32x1xf32> to vector<32x1xf32>
    %13 = vector.broadcast %12 : vector<32x1xf32> to vector<32x128xf32>
    %14 = vector.broadcast %cst_4 : f32 to vector<32x128xf32>
    %15 = arith.select %11, %13, %14 : vector<32x128xi1>, vector<32x128xf32>
    %c0_5 = arith.constant 0 : index
    %c0_6 = arith.constant 0 : index
    %16 = vector.load %arg1[%c0_5, %c0_6] : memref<16x32xf32, #tpu.memory_space<vmem>>, vector<16x32xf32>
    %cst_7 = arith.constant dense<0.000000e+00> : vector<16x128xf32>
    %17 = tpu.matmul %16, %9, %cst_7 {dimension_numbers = #tpu.dot_dimension_numbers<[1], [0], [0], [1], [0, 0, 1, 1], [], []>} : vector<16x32xf32>, vector<32x128xf32>, vector<16x128xf32> -> vector<16x128xf32>
    %c0_8 = arith.constant 0 : index
    %c0_9 = arith.constant 0 : index
    %18 = vector.load %arg2[%c0_8, %c0_9] : memref<16x32xf32, #tpu.memory_space<vmem>>, vector<16x32xf32>
    %cst_10 = arith.constant dense<0.000000e+00> : vector<16x128xf32>
    %19 = tpu.matmul %18, %15, %cst_10 {dimension_numbers = #tpu.dot_dimension_numbers<[1], [0], [0], [1], [0, 0, 1, 1], [], []>} : vector<16x32xf32>, vector<32x128xf32>, vector<16x128xf32> -> vector<16x128xf32>
    %20 = arith.addf %17, %19 : vector<16x128xf32>
    %c0_11 = arith.constant 0 : index
    %21 = memref.load %arg4[%c0_11] : memref<1xf32, #tpu.memory_space<smem>>
    %22 = vector.broadcast %21 : f32 to vector<16x128xf32>
    %23 = arith.addf %20, %22 : vector<16x128xf32>
    %c0_12 = arith.constant 0 : index
    %c0_13 = arith.constant 0 : index
    %24 = vector.load %arg5[%c0_12, %c0_13] : memref<16x128xf32, #tpu.memory_space<vmem>>, vector<16x128xf32>
    tpu.vector_store %arg5[%c0_12, %c0_13], %23 {strides = array<i32>} : memref<16x128xf32, #tpu.memory_space<vmem>>, vector<16x128xf32>,
    return
  }
}

</mosaic_0001>

<bundles_post_ra>
// kernel: tpu_custom_call.1
= control target key start
LH: loop header
LB: loop body
LE: loop exit
PB: predicated region body
PF: predicated region fallthrough
CT: control target
= control target key end

     0   :  { %11 = vsyncpa [#allocation4], 0  ;;  %s629_s0 = inlined_call_operand.vmem [shape: f32[32,1], index: 0, kind: input, shape index: {}]   ;;  %s630_s1 = inlined_call_operand.hbm [shape: f32[16,32], index: 1, kind: input, shape index: {}]   ;;  %s631_s2 = inlined_call_operand.hbm [shape: f32[16,32], index: 2, kind: input, shape index: {}]   ;;  %s632_s3 = inlined_call_operand.vmem [shape: f32[32,32], index: 3, kind: input, shape index: {}]   ;;  %s633_s4 = inlined_call_operand.<no memory space> [shape: f32[1], index: 4, kind: input, shape index: {}]   ;;  %s634_s5 = inlined_call_operand.hbm [shape: f32[16,128], index: 5, kind: output, shape index: {}]  }
   0x1   :  { %12 = vsyncpa [#allocation7], 0 }
   0x2   :  { %13 = vsyncpa [#allocation5], 0  ;;  %s524_s18 = smov [#allocation3]  }
   0x3   :  { %s21_s19 = sshll.u32 %s524_s18, 4  ;;  %s22_s19 = int_to_ptr.vmem [resolvable:$true] %s21_s19 }
   0x4   :  { %s466_s20 = scalar_lea.vmem %s22_s19, 256  ;;  %p471_p1 = scmp.lt.s32.totalorder %s22_s19, %s22_s19 }
   0x5   :  { %p467_p0 = scmp.ne.s32.totalorder %s22_s19, %s466_s20  ;;  %p472_p2 = scmp.lt.s32.totalorder %s466_s20, %s466_s20 }
   0x7   :  { %p473_p3 = por %p472_p2, %p471_p1 }
   0x9   :  { %p474_p4 = pnand %p473_p3, %p467_p0 }
   0xb   :  { %477 = shalt.err (!%p474_p4)
}
   0xc   :  { %s525_s21 = smov 128   ;;  %s526_s22 = smov 8  }
   0xd   :  { %27 = dma.hbm_to_vmem [thread:$0]  %s630_s1, 256, %s22_s19, [#allocation4], %s525_s21, %s525_s21, %s526_s22  }
   0xe   :  { %s527_s25 = smov [#allocation6]  }
   0xf   :  { %s33_s26 = sshll.u32 %s527_s25, 4  ;;  %s34_s26 = int_to_ptr.vmem [resolvable:$true] %s33_s26 }
  0x10   :  { %s486_s27 = scalar_lea.vmem %s34_s26, 256  ;;  %p491_p6 = scmp.lt.s32.totalorder %s34_s26, %s34_s26 }
  0x11   :  { %p487_p5 = scmp.ne.s32.totalorder %s34_s26, %s486_s27  ;;  %p492_p7 = scmp.lt.s32.totalorder %s486_s27, %s486_s27 }
  0x13   :  { %p493_p8 = por %p492_p7, %p491_p6 }
  0x15   :  { %p494_p9 = pnand %p493_p8, %p487_p5 }
  0x17   :  { %497 = shalt.err (!%p494_p9)
}
  0x18   :  { %39 = dma.hbm_to_vmem [thread:$0]  %s631_s2, 256, %s34_s26, [#allocation7], %s525_s21, %s525_s21, %s526_s22  }
  0x19   :  { %518 = dma.done.wait [#allocation4], 256  }
  0x1a   :  { %519 = vsyncadd [#allocation4], 4294967040 }
  0x1b   :  { %520 = dma.done.wait [#allocation7], 256  }
  0x1c   :  { %521 = vsyncadd [#allocation7], 4294967040  ;;  %v528_v0 = vmov 0   ;;  %vm58_vm0 = vcmask 261120   ;;  %v57_v1 = vld [vmem:[%s629_s0 + $0x18] sm:$0xff]  ;;  %v56_v2 = vld [vmem:[%s629_s0 + $0x10] sm:$0xff]  ;;  %v156_v15 = vlaneseq  ;;  %v355_v25 = vstv %s633_s4 }
  0x1d   :  { %457 = vset.pattern.permute.xlu1 %v528_v0  ;;  %456 = vset.pattern.permute.xlu0 %v528_v0  ;;  %v50_v3 = vld [vmem:[%s632_s3] sm:$0xff]  ;;  %v55_v4 = vld [vmem:[%s629_s0 + $0x8] sm:$0xff]  ;;  %v52_v7 = vld [vmem:[%s632_s3 + $0x10] sm:$0xff]  ;;  %s529_s19 = smov [#allocation8]  }
  0x1e   :  { %414 = vmatprep.subr.mxu0 %v57_v1  ;;  %422 = vmatprep.mubr.msk.f32.mxu0 %vm58_vm0, %v50_v3  ;;  %v54_v5 = vld [vmem:[%s629_s0] sm:$0xff]  ;;  %v51_v6 = vld [vmem:[%s632_s3 + $0x8] sm:$0xff]  ;;  %v53_v8 = vld [vmem:[%s632_s3 + $0x18] sm:$0xff]  ;;  %v157_v16 = vand.u32 127, %v156_v15  ;;  %s365_s20 = sshll.u32 %s529_s19, 4  ;;  %s366_s20 = int_to_ptr.vmem [resolvable:$true] %s365_s20 }
  0x1f   :  { %415 = vmatpush3.msra.mxu0 %v57_v1  ;;  %v190_v13 = vld [vmem:[#allocation6] sm:$0xff]  ;;  %v188_v14 = vld [vmem:[#allocation3] sm:$0xff]  ;;  %v191_v21 = vld [vmem:[#allocation6 + $0x8] sm:$0xff]  ;;  %s498_s23 = scalar_lea.vmem %s366_s20, 256  ;;  %p503_p11 = scmp.lt.s32.totalorder %s366_s20, %s366_s20 }
  0x20   :  { %416 = vmatprep.subr.mxu0 %v56_v2  ;;  %436 = vmatprep.mubr.msk.f32.mxu1 %vm58_vm0, %v190_v13  ;;  %vm183_vm1 = vcmp.eq.s32.totalorder %v157_v16, 1  ;;  %vm158_vm2 = vcmp.eq.s32.totalorder %v157_v16, 0  ;;  %v189_v22 = vld [vmem:[#allocation3 + $0x8] sm:$0xff]  ;;  %p499_p10 = scmp.ne.s32.totalorder %s366_s20, %s498_s23  ;;  %p504_p12 = scmp.lt.s32.totalorder %s498_s23, %s498_s23 }
  0x21   :  { %417 = vmatpush3.msra.mxu0 %v56_v2 }
  0x22   :  { %418 = vmatprep.subr.mxu0 %v55_v4  ;;  %p505_p13 = por %p504_p12, %p503_p11 }
  0x23   :  { %419 = vmatpush3.msra.mxu0 %v55_v4 }
  0x24   :  { %420 = vmatprep.subr.mxu0 %v54_v5  ;;  %p506_p0 = pnand %p505_p13, %p499_p10 }
  0x25   :  { %421 = vmatpush3.msra.mxu0 %v54_v5 }
  0x26   :  { %423 = vmatmul.mubr.msk.f32.vlgmr.msra.gmra.mxu0 %vm58_vm0, %v51_v6 }
  0x27   :  { %425 = vmatprep.mubr.msk.f32.mxu0 %vm58_vm0, %v52_v7 }
  0x2a   :  { %426 = vmatmul.mubr.msk.f32.gmra.mxu0 %vm58_vm0, %v53_v8 }
  0x2b   :  { %447 = vmatprep.mubr.msk.f32.mxu0 %vm58_vm0, %v188_v14 }
  0xe6   :  { %v424_v9 = vpop.f32.mrf.mxu0 }
  0xe7   :  { %166 = vperm.xlu1 %457, %v424_v9  }
  0xe8   :  { %v137_v10 = vpop.f32.mrf.mxu0 }
  0xea   :  { %v427_v11 = vpop.f32.mrf.mxu0 }
  0xeb   :  { %161 = vperm.xlu1 %457, %v137_v10   ;;  %176 = vperm.xlu0 %456, %v427_v11  }
  0xec   :  { %v147_v12 = vpop.f32.mrf.mxu0 }
  0xef   :  { %171 = vperm.xlu0 %456, %v147_v12  }
 0x162   :  { %v167_v18 = vpop.permute.xlu1 %166 }
 0x166   :  { %v177_v17 = vpop.permute.xlu0 %176  ;;  %v162_v20 = vpop.permute.xlu1 %161 }
 0x167   :  { %428 = vmatprep.subr.msk.mxu1 %vm183_vm1, %v177_v17  ;;  %439 = vmatprep.subr.msk.mxu0 %vm158_vm2, %v177_v17 }
 0x168   :  { %429 = vmatpush3.msk.msra.mxu1 %vm183_vm1, %v177_v17  ;;  %440 = vmatpush3.msk.msra.mxu0 %vm158_vm2, %v177_v17 }
 0x16a   :  { %v172_v19 = vpop.permute.xlu0 %171 }
 0x16b   :  { %430 = vmatprep.subr.msk.mxu1 %vm183_vm1, %v172_v19  ;;  %441 = vmatprep.subr.msk.mxu0 %vm158_vm2, %v172_v19 }
 0x16c   :  { %431 = vmatpush3.msk.msra.mxu1 %vm183_vm1, %v172_v19  ;;  %442 = vmatpush3.msk.msra.mxu0 %vm158_vm2, %v172_v19 }
 0x16d   :  { %432 = vmatprep.subr.msk.mxu1 %vm183_vm1, %v167_v18  ;;  %443 = vmatprep.subr.msk.mxu0 %vm158_vm2, %v167_v18 }
 0x16e   :  { %433 = vmatpush3.msk.msra.mxu1 %vm183_vm1, %v167_v18  ;;  %444 = vmatpush3.msk.msra.mxu0 %vm158_vm2, %v167_v18 }
 0x16f   :  { %434 = vmatprep.subr.msk.mxu1 %vm183_vm1, %v162_v20  ;;  %445 = vmatprep.subr.msk.mxu0 %vm158_vm2, %v162_v20 }
 0x170   :  { %435 = vmatpush3.msk.msra.mxu1 %vm183_vm1, %v162_v20  ;;  %446 = vmatpush3.msk.msra.mxu0 %vm158_vm2, %v162_v20 }
 0x171   :  { %437 = vmatmul.mubr.msk.f32.vlgmr.msra.gmra.mxu1 %vm58_vm0, %v191_v21  ;;  %448 = vmatmul.mubr.msk.f32.vlgmr.msra.gmra.mxu0 %vm58_vm0, %v189_v22 }
 0x231   :  { %v438_v23 = vpop.f32.mrf.mxu1  ;;  %v449_v24 = vpop.f32.mrf.mxu0 }
 0x232   :  { %v351_v26 = vadd.f32 %v449_v24, %v438_v23 }
 0x233   :  { %v264_v27 = vpop.f32.mrf.mxu1  ;;  %v345_v28 = vpop.f32.mrf.mxu0 }
 0x234   :  { %v357_v29 = vadd.f32 %v355_v25, %v351_v26  ;;  %v346_v30 = vadd.f32 %v345_v28, %v264_v27 }
 0x236   :  { %359 = vst [vmem:[#allocation8 + $0x8] sm:$0xff] %v357_v29  ;;  %v356_v31 = vadd.f32 %v355_v25, %v346_v30 }
 0x238   :  { %358 = vst [vmem:[#allocation8] sm:$0xff] %v356_v31 }
 0x239   :  { %509 = shalt.err (!%p506_p0)
}
 0x23a   :  { %371 = dma.vmem_to_hbm [thread:$0]  %s366_s20, 256, %s634_s5, [#allocation5], %s525_s21, %s525_s21, %s526_s22  }
 0x23b   :  { %522 = dma.done.wait [#allocation5], 256  }
 0x23c   :  { %523 = vsyncadd [#allocation5], 4294967040 }
 0x23d   :  { %375 = vsyncpa [#allocation4], 1 }
 0x23e   :  { %376 = vsyncpa [#allocation7], 1 }
 0x23f   :  { %377 = vsyncpa [#allocation5], 1 }

</bundles_post_ra>
